<compile_context>
chip_gen: v5e
topology: v5e:2x2
jax: 0.10.0
libtpu: 0.0.40
codegen_flags: <defaults>
</compile_context>

<pallas_src>
import functools

import jax
import jax.numpy as jnp
import numpy as np
from jax.experimental import pallas as pl
from jax.experimental.pallas import tpu as pltpu


def _rowtile(m, max_tile=512):
    """Largest tile <= max_tile dividing m (rows of the flattened GEMM)."""
    for t in (512, 256, 128, 64, 32, 16, 8):
        if t <= max_tile and t <= m and m % t == 0:
            return t
    return m


def _qkvt_proj_kernel(x_ref, w_ref, o_ref):
    # x_ref: (tm, D), w_ref: (D, 4*inner)  [resident], o_ref: (tm, 4*inner)
    o_ref[...] = jnp.dot(
        x_ref[...].astype(jnp.bfloat16),
        w_ref[...].astype(jnp.bfloat16),
        preferred_element_type=jnp.float32,
    ).astype(o_ref.dtype)


def _out_proj_kernel(x_ref, w_ref, b_ref, o_ref):
    # x_ref: (tm, 2*inner), w_ref: (2*inner, D) [resident], b_ref: (1, D)
    acc = jnp.dot(
        x_ref[...].astype(jnp.bfloat16),
        w_ref[...].astype(jnp.bfloat16),
        preferred_element_type=jnp.float32,
    )
    o_ref[...] = (acc + b_ref[...]).astype(o_ref.dtype)


def _attention_kernel(a2_ref, qkvt_ref, o_ref, *, heads, dim_head, scale):
    # One program per batch element; all heads fused.
    # a2_ref: (n, n) resident; qkvt_ref: (1, n, 4*inner); o_ref: (1, n, 2*inner)
    inner = heads * dim_head
    qkvt = qkvt_ref[0]                                   # (n, 4*inner) f32
    a2 = a2_ref[...].astype(jnp.bfloat16)                # (n, n), hoisted constant

    # Temporal branch for ALL heads in a single lane-dense matmul: (n,n)@(n,inner)
    t_all = qkvt[:, 3 * inner:].astype(jnp.bfloat16)
    out2 = jnp.dot(a2, t_all, preferred_element_type=jnp.float32)   # (n, inner)

    for h in range(heads):                               # static, fully unrolled
        lo = h * dim_head
        q = (qkvt[:, lo:lo + dim_head] * scale).astype(jnp.bfloat16)
        k = qkvt[:, inner + lo:inner + lo + dim_head].astype(jnp.bfloat16)
        v = qkvt[:, 2 * inner + lo:2 * inner + lo + dim_head].astype(jnp.bfloat16)

        dots = jnp.dot(q, k.T, preferred_element_type=jnp.float32)  # (n, n)
        m = jnp.max(dots, axis=-1, keepdims=True)
        e = jnp.exp(dots - m)
        attn1 = e * pl.reciprocal(jnp.sum(e, axis=-1, keepdims=True), approx=True)
        out1 = jnp.dot(attn1.astype(jnp.bfloat16), v,
                       preferred_element_type=jnp.float32)          # (n, dh)

        # 'b n (h d)' layout: per head h the features are [softmax part | temporal part]
        o_ref[0, :, 2 * lo:2 * lo + dim_head] = out1.astype(o_ref.dtype)
        o_ref[0, :, 2 * lo + dim_head:2 * lo + 2 * dim_head] = (
            out2[:, lo:lo + dim_head].astype(o_ref.dtype))


def attention_forward(x, w_qkv, w_out, b_out, *, heads, dim_head):
    b, n, d = x.shape
    inner = heads * dim_head
    scale = dim_head ** (-0.5)
    m_rows = b * n

    # --- to_qkv projection: row-tiled GEMM over (B*N, D) ---------------------
    tm = _rowtile(m_rows)
    x2 = x.reshape(m_rows, d)                            # contiguous reshape (free)
    qkvt = pl.pallas_call(
        _qkvt_proj_kernel,
        out_shape=jax.ShapeDtypeStruct((m_rows, 4 * inner), x.dtype),
        grid=(m_rows // tm,),
        in_specs=[
            pl.BlockSpec((tm, d), lambda i: (i, 0)),
            pl.BlockSpec((d, 4 * inner), lambda i: (0, 0)),   # resident weight
        ],
        out_specs=pl.BlockSpec((tm, 4 * inner), lambda i: (i, 0)),
        compiler_params=pltpu.CompilerParams(dimension_semantics=("parallel",)),
    )(x2, w_qkv)
    qkvt = qkvt.reshape(b, n, 4 * inner)                 # contiguous reshape (free)

    # --- temporal kernel a2 (batch/head invariant) -> computed once ----------
    tmp_n = jnp.linspace(1.0, n, n)
    tg = jnp.abs(tmp_n[None, :] - tmp_n[:, None])
    a2 = jnp.exp(-tg / jnp.exp(1.0))
    a2 = a2 / a2.sum(-1)   # torch-style broadcast over the LAST axis (matches module)

    # --- attention core: one program per batch, heads fused ------------------
    attn_out = pl.pallas_call(
        functools.partial(_attention_kernel, heads=heads, dim_head=dim_head,
                          scale=scale),
        out_shape=jax.ShapeDtypeStruct((b, n, 2 * inner), x.dtype),
        grid=(b,),
        in_specs=[
            pl.BlockSpec((n, n), lambda i: (0, 0)),           # resident a2
            pl.BlockSpec((1, n, 4 * inner), lambda i: (i, 0, 0)),
        ],
        out_specs=pl.BlockSpec((1, n, 2 * inner), lambda i: (i, 0, 0)),
        compiler_params=pltpu.CompilerParams(dimension_semantics=("parallel",)),
    )(a2, qkvt)

    # --- to_out projection (Dropout(p=0.0) == identity) ----------------------
    out2d = attn_out.reshape(m_rows, 2 * inner)          # contiguous reshape (free)
    y = pl.pallas_call(
        _out_proj_kernel,
        out_shape=jax.ShapeDtypeStruct((m_rows, d), x.dtype),
        grid=(m_rows // tm,),
        in_specs=[
            pl.BlockSpec((tm, 2 * inner), lambda i: (i, 0)),
            pl.BlockSpec((2 * inner, d), lambda i: (0, 0)),   # resident weight
            pl.BlockSpec((1, d), lambda i: (0, 0)),           # resident bias
        ],
        out_specs=pl.BlockSpec((tm, d), lambda i: (i, 0)),
        compiler_params=pltpu.CompilerParams(dimension_semantics=("parallel",)),
    )(out2d, w_out, b_out.reshape(1, d))

    return y.reshape(b, n, d)


def attention_reference(x, w_qkv, w_out, b_out, *, heads, dim_head):
    """Pure-JAX f32 reference mirroring the PyTorch forward exactly."""
    b, n, d = x.shape
    inner = heads * dim_head
    scale = dim_head ** (-0.5)

    qkvt = x @ w_qkv
    q, k, v, t = jnp.split(qkvt, 4, axis=-1)

    def to_heads(z):
        return z.reshape(b, n, heads, dim_head).transpose(0, 2, 1, 3)

    q, k, v, t = map(to_heads, (q, k, v, t))
    dots = jnp.einsum("bhnd,bhmd->bhnm", q, k) * scale
    attn1 = jax.nn.softmax(dots, axis=-1)

    tmp_n = jnp.linspace(1.0, n, n)
    tg = jnp.abs(tmp_n[None, :] - tmp_n[:, None])
    a2 = jnp.exp(-tg / jnp.exp(1.0))
    a2 = a2 / a2.sum(-1)  # torch-style broadcast over last axis
    a2 = jnp.broadcast_to(a2[None, None], (b, heads, n, n))

    out = jnp.concatenate(
        [jnp.einsum("bhnm,bhmd->bhnd", attn1, v),
         jnp.einsum("bhnm,bhmd->bhnd", a2, t)],
        axis=-1,
    )
    out = out.transpose(0, 2, 1, 3).reshape(b, n, 2 * inner)
    return out @ w_out + b_out


if __name__ == "__main__":
    # Small, module-consistent shapes.
    B, N, DIM = 2, 8, 32
    HEADS, DIM_HEAD = 4, 16
    INNER = HEADS * DIM_HEAD

    key = jax.random.PRNGKey(0)
    kx, kw1, kw2, kb = jax.random.split(key, 4)

    x = jax.random.normal(kx, (B, N, DIM), dtype=jnp.float32)
    # to_qkv: Linear(dim, 4*inner, bias=False) -> stored as (dim, 4*inner)
    w_qkv = jax.random.normal(kw1, (DIM, 4 * INNER), dtype=jnp.float32) * 0.05
    # to_out: Linear(2*inner, dim) -> stored as (2*inner, dim) plus bias (dim,)
    w_out = jax.random.normal(kw2, (2 * INNER, DIM), dtype=jnp.float32) * 0.05
    b_out = jax.random.normal(kb, (DIM,), dtype=jnp.float32) * 0.01

    y = attention_forward(x, w_qkv, w_out, b_out, heads=HEADS, dim_head=DIM_HEAD)
    y = jax.block_until_ready(y)

    y_ref = attention_reference(x, w_qkv, w_out, b_out, heads=HEADS, dim_head=DIM_HEAD)
    # bf16 MXU operands (f32 accumulation) -> loosened tolerance vs f32 reference.
    np.testing.assert_allclose(np.asarray(y), np.asarray(y_ref), rtol=2e-2, atol=2e-2)

    print("KERNEL_OK")
</pallas_src>

<mosaic_0001>
module attributes {stable_mosaic.version = 11 : i64} {
  func.func @_qkvt_proj_kernel(%arg0: i32, %arg1: memref<16x32xf32, #tpu.memory_space<vmem>>, %arg2: memref<32x256xf32, #tpu.memory_space<vmem>>, %arg3: memref<16x256xf32, #tpu.memory_space<vmem>>) attributes {dimension_semantics = [#tpu.dimension_semantics<parallel>], iteration_bounds = array<i64: 1>, scalar_prefetch = 0 : i64, scratch_operands = 0 : i64, tpu.core_type = #tpu.core_type<tc>, window_params = [{transform_indices = @transform_0, window_bounds = array<i64: 16, 32>}, {pipeline_mode = #tpu.pipeline_mode<synchronous>, transform_indices = @transform_1, window_bounds = array<i64: 32, 256>}, {transform_indices = @transform_2, window_bounds = array<i64: 16, 256>}]} {
    %c0 = arith.constant 0 : index
    %c0_0 = arith.constant 0 : index
    %0 = vector.load %arg1[%c0, %c0_0] : memref<16x32xf32, #tpu.memory_space<vmem>>, vector<16x32xf32>
    %1 = arith.truncf %0 : vector<16x32xf32> to vector<16x32xbf16>
    %c0_1 = arith.constant 0 : index
    %c0_2 = arith.constant 0 : index
    %2 = vector.load %arg2[%c0_1, %c0_2] : memref<32x256xf32, #tpu.memory_space<vmem>>, vector<32x256xf32>
    %3 = arith.truncf %2 : vector<32x256xf32> to vector<32x256xbf16>
    %cst = arith.constant dense<0.000000e+00> : vector<16x256xf32>
    %4 = tpu.matmul %1, %3, %cst {dimension_numbers = #tpu.dot_dimension_numbers<[1], [0], [0], [1], [0, 0, 1, 1], [], []>} : vector<16x32xbf16>, vector<32x256xbf16>, vector<16x256xf32> -> vector<16x256xf32>
    %c0_3 = arith.constant 0 : index
    %c0_4 = arith.constant 0 : index
    %5 = vector.load %arg3[%c0_3, %c0_4] : memref<16x256xf32, #tpu.memory_space<vmem>>, vector<16x256xf32>
    tpu.vector_store %arg3[%c0_3, %c0_4], %4 {strides = array<i32>} : memref<16x256xf32, #tpu.memory_space<vmem>>, vector<16x256xf32>,
    return
  }
  func.func @transform_0(%arg0: i32) -> (i32, i32) {
    %c0_i32 = arith.constant 0 : i32
    %c0_i32_0 = arith.constant 0 : i32
    return %arg0, %c0_i32 : i32, i32
  }
  func.func @transform_1(%arg0: i32) -> (i32, i32) {
    %c0_i32 = arith.constant 0 : i32
    %c0_i32_0 = arith.constant 0 : i32
    %c0_i32_1 = arith.constant 0 : i32
    return %c0_i32, %c0_i32_0 : i32, i32
  }
  func.func @transform_2(%arg0: i32) -> (i32, i32) {
    %c0_i32 = arith.constant 0 : i32
    %c0_i32_0 = arith.constant 0 : i32
    return %arg0, %c0_i32 : i32, i32
  }
}

</mosaic_0001>

<bundles_post_ra>
// kernel: tpu_custom_call.1
= control target key start
LH: loop header
LB: loop body
LE: loop exit
PB: predicated region body
PF: predicated region fallthrough
CT: control target
= control target key end

     0   :  { %7 = vsyncpa [#allocation3], 0  ;;  %s240_s0 = inlined_call_operand.hbm [shape: f32[16,32], index: 0, kind: input, shape index: {}]   ;;  %s241_s1 = inlined_call_operand.hbm [shape: f32[32,256], index: 1, kind: input, shape index: {}]   ;;  %s242_s2 = inlined_call_operand.hbm [shape: f32[16,256], index: 2, kind: output, shape index: {}]  }
   0x1   :  { %8 = vsyncpa [#allocation6], 0 }
   0x2   :  { %9 = vsyncpa [#allocation4], 0  ;;  %s14_s11 = sshll.u32 %s240_s0, 4  ;;  %s203_s12 = smov [#allocation2]   ;;  %s15_s11 = int_to_ptr.hbm [resolvable:$true] %s14_s11 }
   0x3   :  { %s16_s13 = sshll.u32 %s203_s12, 4  ;;  %s27_s16 = sshll.u32 %s241_s1, 4  ;;  %s17_s13 = int_to_ptr.vmem [resolvable:$true] %s16_s13  ;;  %s28_s16 = int_to_ptr.hbm [resolvable:$true] %s27_s16 }
   0x4   :  { %s204_s17 = smov 128   ;;  %s205_s18 = smov 8  }
   0x5   :  { %22 = dma.hbm_to_vmem [thread:$0]  %s15_s11, 256, %s17_s13, [#allocation3], %s204_s17, %s204_s17, %s205_s18  }
   0x6   :  { %s206_s19 = smov [#allocation5]   ;;  %s207_s21 = smov 256  }
   0x7   :  { %s29_s20 = sshll.u32 %s206_s19, 4  ;;  %s208_s22 = smov 16   ;;  %s30_s20 = int_to_ptr.vmem [resolvable:$true] %s29_s20 }
   0x8   :  { %35 = dma.hbm_to_vmem [thread:$0]  %s28_s16, 1024, %s30_s20, [#allocation6], %s207_s21, %s207_s21, %s208_s22  }
   0x9   :  { %197 = dma.done.wait [#allocation3], 256  }
   0xa   :  { %198 = vsyncadd [#allocation3], 4294967040 }
   0xb   :  { %199 = dma.done.wait [#allocation6], 1024  }
   0xc   :  { %200 = vsyncadd [#allocation6], 4294966272  ;;  %v52_v0 = vld [vmem:[#allocation5 + $0x20] sm:$0xff]  ;;  %v54_v1 = vld [vmem:[#allocation5 + $0x30] sm:$0xff]  ;;  %vm60_vm0 = vcmask 261120   ;;  %s209_s0 = smov [#allocation7]  }
   0xd   :  { %v53_v2 = vld [vmem:[#allocation5 + $0x28] sm:$0xff]  ;;  %v58_v3 = vpack.c.bf16 %v54_v1, %v52_v0  ;;  %v55_v4 = vld [vmem:[#allocation5 + $0x38] sm:$0xff]  ;;  %v48_v5 = vld [vmem:[#allocation5] sm:$0xff]  ;;  %s100_s1 = sshll.u32 %s209_s0, 4  ;;  %s102_s25 = sshll.u32 %s242_s2, 4  ;;  %s101_s1 = int_to_ptr.vmem [resolvable:$true] %s100_s1  ;;  %s103_s25 = int_to_ptr.hbm [resolvable:$true] %s102_s25 }
   0xe   :  { %v50_v6 = vld [vmem:[#allocation5 + $0x10] sm:$0xff]  ;;  %v59_v7 = vpack.c.bf16 %v55_v4, %v53_v2  ;;  %v49_v8 = vld [vmem:[#allocation5 + $0x8] sm:$0xff]  ;;  %v51_v9 = vld [vmem:[#allocation5 + $0x18] sm:$0xff] }
   0xf   :  { %70 = vmatpush.bf16.msra.mxu0 %v58_v3  ;;  %v56_v10 = vpack.c.bf16 %v50_v6, %v48_v5  ;;  %v45_v11 = vld [vmem:[#allocation2] sm:$0xff]  ;;  %v46_v12 = vld [vmem:[#allocation2 + $0x8] sm:$0xff]  ;;  %v57_v13 = vpack.c.bf16 %v51_v9, %v49_v8 }
  0x10   :  { %84 = vmatpush.bf16.msra.mxu1 %v59_v7  ;;  %v47_v14 = vpack.c.bf16 %v46_v12, %v45_v11 }
  0x13   :  { %71 = vmatpush.bf16.msra.mxu0 %v56_v10 }
  0x14   :  { %85 = vmatpush.bf16.msra.mxu1 %v57_v13 }
  0x16   :  { %116 = vmatmul.msk.bf16.vlgmr.msra.gmra.mxu0 %vm60_vm0, %v47_v14 }
  0x17   :  { %117 = vmatmul.msk.bf16.vlgmr.msra.gmra.mxu1 %vm60_vm0, %v47_v14 }
  0x93   :  { %v73_v15 = vpop.f32.mrf.mxu0 }
  0x94   :  { %92 = vst [vmem:[#allocation7] sm:$0xff] %v73_v15  ;;  %v87_v16 = vpop.f32.mrf.mxu1 }
  0x95   :  { %93 = vst [vmem:[#allocation7 + $0x8] sm:$0xff] %v87_v16 }
  0x9b   :  { %v75_v17 = vpop.f32.mrf.mxu0 }
  0x9c   :  { %94 = vst [vmem:[#allocation7 + $0x10] sm:$0xff] %v75_v17  ;;  %v89_v18 = vpop.f32.mrf.mxu1 }
  0x9d   :  { %95 = vst [vmem:[#allocation7 + $0x18] sm:$0xff] %v89_v18 }
  0x9e   :  { %108 = dma.vmem_to_hbm [thread:$0]  %s101_s1, 512, %s103_s25, [#allocation4], %s207_s21, %s207_s21, %s208_s22  }
  0x9f   :  { %201 = dma.done.wait [#allocation4], 512  }
  0xa0   :  { %202 = vsyncadd [#allocation4], 4294966784 }
  0xa1   :  { %113 = vsyncpa [#allocation3], 1 }
  0xa2   :  { %114 = vsyncpa [#allocation6], 1 }
  0xa3   :  { %115 = vsyncpa [#allocation4], 1 }

</bundles_post_ra>
